<compile_context>
chip_gen: v6e
topology: v6e:2x2x1
jax: 0.10.0
libtpu: 0.0.40
codegen_flags: <defaults>
</compile_context>

<pallas_src>
import functools

import jax
import jax.numpy as jnp
from jax.experimental import pallas as pl
from jax.experimental.pallas import tpu as pltpu

_LANES = 128
_SUBLANES = 8
_MAX_TILE_ROWS = 2048   # 2048*128*4B = 1 MiB per f32 input block; x2 inputs x2 buffers = 4 MiB VMEM
_NUM_SHARDS = 2         # leading "parallel" axis -> both v7x TensorCores; harmless on 1-TC chips


def _round_up(x, m):
    return ((x + m - 1) // m) * m


def _dcan_data_error_kernel(pred_ref, target_ref, out_ref, acc_ref, *,
                            eps, tile_rows, rows, steps_per_shard):
    c = pl.program_id(0)          # shard (parallel)
    i = pl.program_id(1)          # step within shard (reduction)

    @pl.when(i == 0)
    def _():
        acc_ref[...] = jnp.zeros_like(acc_ref)

    # Logical (unclamped) step -> first row covered by this tile.
    step = c * steps_per_shard + i
    row0 = step * tile_rows

    pred = pred_ref[...].astype(jnp.float32)
    target = target_ref[...].astype(jnp.float32)

    # Rows past the end of the slab (partial last tile, or clamped duplicate
    # steps) are masked out; lane-padded elements have target == 0 so the
    # target test masks them. jnp.where is a select, so garbage/inf/NaN in the
    # unselected branch cannot leak into the sum.
    row_idx = row0 + jax.lax.broadcasted_iota(jnp.int32, (tile_rows, _LANES), 0)
    mask = (row_idx < rows) & (target >= (1.0 - eps))
    vals = jnp.where(mask, -jnp.log(pred), 0.0)

    # Keep the steady-state loop VPU-only: fold the tile into an (8, 128)
    # accumulator; defer the cross-lane reduce + SMEM store to the last step.
    acc_ref[...] += jnp.sum(
        vals.reshape(tile_rows // _SUBLANES, _SUBLANES, _LANES), axis=0)

    @pl.when(i == steps_per_shard - 1)
    def _():
        out_ref[0, 0] = jnp.sum(acc_ref[...])


def dcan_data_error_pallas(pred, target, eps=1e-12):
    """Pallas TPU implementation of DcanDataError.forward(pred, target).

    Returns a scalar float32: -sum(log(pred[target >= 1 - eps])).
    """
    assert pred.shape == target.shape
    pred_f = pred.reshape(-1)
    target_f = target.reshape(-1)
    n = pred_f.shape[0]

    # Only pad (at most 127 elements) when the flat size is not lane-aligned;
    # no full-array host-side cast/copy (any cast happens inside the kernel).
    rem = n % _LANES
    if rem:
        pad = _LANES - rem
        pred_f = jnp.pad(pred_f, (0, pad), constant_values=1)    # log(1) = 0
        target_f = jnp.pad(target_f, (0, pad), constant_values=0)  # mask False
    rows = pred_f.shape[0] // _LANES
    pred_2d = pred_f.reshape(rows, _LANES)
    target_2d = target_f.reshape(rows, _LANES)

    # Sublane granularity depends on element width (8 for f32, 16 for bf16, 32 for i8).
    itemsize = max(jnp.dtype(pred_2d.dtype).itemsize, 1)
    min_sublanes = max(_SUBLANES, 32 // itemsize)
    tile_rows = min(_round_up(_MAX_TILE_ROWS, min_sublanes),
                    _round_up(rows, min_sublanes))

    total_steps = -(-rows // tile_rows)
    shards = max(1, min(_NUM_SHARDS, total_steps))
    steps_per_shard = -(-total_steps // shards)

    def in_map(c, i):
        # Clamp so fully-out-of-range steps re-fetch the last valid block
        # (their contribution is masked to zero inside the kernel).
        return (jnp.minimum(c * steps_per_shard + i, total_steps - 1), 0)

    kernel = functools.partial(
        _dcan_data_error_kernel,
        eps=float(eps), tile_rows=tile_rows, rows=rows,
        steps_per_shard=steps_per_shard)

    partials = pl.pallas_call(
        kernel,
        out_shape=jax.ShapeDtypeStruct((shards, 1), jnp.float32),
        grid_spec=pltpu.PrefetchScalarGridSpec(
            num_scalar_prefetch=0,
            grid=(shards, steps_per_shard),
            in_specs=[
                pl.BlockSpec((tile_rows, _LANES), in_map),
                pl.BlockSpec((tile_rows, _LANES), in_map),
            ],
            out_specs=pl.BlockSpec(
                (1, 1), lambda c, i: (c, 0), memory_space=pltpu.SMEM),
            scratch_shapes=[pltpu.VMEM((_SUBLANES, _LANES), jnp.float32)],
        ),
        compiler_params=pltpu.CompilerParams(
            dimension_semantics=("parallel", "arbitrary")),
    )(pred_2d, target_2d)

    return jnp.sum(partials)


def _reference(pred, target, eps=1e-12):
    mask = target >= (1.0 - eps)
    return -jnp.sum(jnp.where(mask, jnp.log(pred), 0.0))


if __name__ == "__main__":
    key = jax.random.PRNGKey(0)
    k_pred, k_tgt = jax.random.split(key)

    # Small shapes consistent with a segmentation-style DCAN loss: NCHW maps.
    shape = (2, 4, 16, 16)
    # Predictions are probabilities in (0, 1).
    pred = jax.nn.sigmoid(jax.random.normal(k_pred, shape, dtype=jnp.float32))
    # Binary target labels.
    target = (jax.random.uniform(k_tgt, shape) > 0.5).astype(jnp.float32)

    eps = 1e-12
    out = dcan_data_error_pallas(pred, target, eps)
    jax.block_until_ready(out)

    ref = _reference(pred, target, eps)
    assert jnp.allclose(out, ref, rtol=1e-5, atol=1e-5), (out, ref)
    print("KERNEL_OK")
</pallas_src>

<mosaic_0001>
module attributes {stable_mosaic.version = 11 : i64} {
  func.func @_dcan_data_error_kernel(%arg0: i32, %arg1: i32, %arg2: memref<16x128xf32, #tpu.memory_space<vmem>>, %arg3: memref<16x128xf32, #tpu.memory_space<vmem>>, %arg4: memref<1x1xf32, #tpu.memory_space<smem>>, %arg5: memref<8x128xf32, #tpu.memory_space<vmem>>) attributes {dimension_semantics = [#tpu.dimension_semantics<parallel>, #tpu.dimension_semantics<arbitrary>], iteration_bounds = array<i64: 1, 1>, scalar_prefetch = 0 : i64, scratch_operands = 1 : i64, tpu.core_type = #tpu.core_type<tc>, window_params = [{transform_indices = @transform_0, window_bounds = array<i64: 16, 128>}, {transform_indices = @transform_1, window_bounds = array<i64: 16, 128>}, {transform_indices = @transform_2, window_bounds = array<i64: 1, 1>}]} {
    %c0_i32 = arith.constant 0 : i32
    %0 = arith.cmpi eq, %arg1, %c0_i32 : i32
    %1 = arith.extui %0 : i1 to i32
    %c0_i32_0 = arith.constant 0 : i32
    %2 = arith.cmpi ne, %1, %c0_i32_0 : i32
    scf.if %2 {
      %cst_14 = arith.constant 0.000000e+00 : f32
      %29 = vector.broadcast %cst_14 : f32 to vector<8x128xf32>
      %c0_15 = arith.constant 0 : index
      %c0_16 = arith.constant 0 : index
      %30 = vector.load %arg5[%c0_15, %c0_16] : memref<8x128xf32, #tpu.memory_space<vmem>>, vector<8x128xf32>
      tpu.vector_store %arg5[%c0_15, %c0_16], %29 {strides = array<i32>} : memref<8x128xf32, #tpu.memory_space<vmem>>, vector<8x128xf32>,
    } else {
    }
    %c1_i32 = arith.constant 1 : i32
    %3 = arith.muli %arg0, %c1_i32 : i32
    %4 = arith.addi %3, %arg1 : i32
    %c16_i32 = arith.constant 16 : i32
    %5 = arith.muli %4, %c16_i32 : i32
    %c0 = arith.constant 0 : index
    %c0_1 = arith.constant 0 : index
    %6 = vector.load %arg2[%c0, %c0_1] : memref<16x128xf32, #tpu.memory_space<vmem>>, vector<16x128xf32>
    %c0_2 = arith.constant 0 : index
    %c0_3 = arith.constant 0 : index
    %7 = vector.load %arg3[%c0_2, %c0_3] : memref<16x128xf32, #tpu.memory_space<vmem>>, vector<16x128xf32>
    %8 = tpu.iota {dimensions = array<i32: 0>} : vector<16x128xi32>
    %9 = vector.broadcast %5 : i32 to vector<16x128xi32>
    %10 = arith.addi %9, %8 : vector<16x128xi32>
    %c16_i32_4 = arith.constant 16 : i32
    %11 = vector.broadcast %c16_i32_4 : i32 to vector<16x128xi32>
    %12 = arith.cmpi slt, %10, %11 : vector<16x128xi32>
    %cst = arith.constant 1.000000e+00 : f32
    %13 = vector.broadcast %cst : f32 to vector<16x128xf32>
    %14 = arith.cmpf oge, %7, %13 : vector<16x128xf32>
    %15 = arith.andi %12, %14 : vector<16x128xi1>
    %16 = math.log %6 : vector<16x128xf32>
    %cst_5 = arith.constant 0.000000e+00 : f32
    %17 = vector.broadcast %cst_5 : f32 to vector<16x128xf32>
    %18 = arith.subf %17, %16 : vector<16x128xf32>
    %cst_6 = arith.constant 0.000000e+00 : f32
    %19 = vector.broadcast %cst_6 : f32 to vector<16x128xf32>
    %20 = arith.select %15, %18, %19 : vector<16x128xi1>, vector<16x128xf32>
    %c0_7 = arith.constant 0 : index
    %c0_8 = arith.constant 0 : index
    %21 = vector.load %arg5[%c0_7, %c0_8] : memref<8x128xf32, #tpu.memory_space<vmem>>, vector<8x128xf32>
    %22 = vector.shape_cast %20 : vector<16x128xf32> to vector<2x8x128xf32>
    %cst_9 = arith.constant dense<0.000000e+00> : vector<8x128xf32>
    %23 = vector.multi_reduction <add>, %22, %cst_9 [0] : vector<2x8x128xf32> to vector<8x128xf32>
    %24 = arith.addf %21, %23 : vector<8x128xf32>
    %c0_10 = arith.constant 0 : index
    %c0_11 = arith.constant 0 : index
    %25 = vector.load %arg5[%c0_10, %c0_11] : memref<8x128xf32, #tpu.memory_space<vmem>>, vector<8x128xf32>
    tpu.vector_store %arg5[%c0_10, %c0_11], %24 {strides = array<i32>} : memref<8x128xf32, #tpu.memory_space<vmem>>, vector<8x128xf32>,
    %c0_i32_12 = arith.constant 0 : i32
    %26 = arith.cmpi eq, %arg1, %c0_i32_12 : i32
    %27 = arith.extui %26 : i1 to i32
    %c0_i32_13 = arith.constant 0 : i32
    %28 = arith.cmpi ne, %27, %c0_i32_13 : i32
    scf.if %28 {
      %c0_14 = arith.constant 0 : index
      %c0_15 = arith.constant 0 : index
      %29 = vector.load %arg5[%c0_14, %c0_15] : memref<8x128xf32, #tpu.memory_space<vmem>>, vector<8x128xf32>
      %30 = vector.shape_cast %29 : vector<8x128xf32> to vector<1x8x128xf32>
      %cst_16 = arith.constant dense<0.000000e+00> : vector<1xf32>
      %31 = vector.multi_reduction <add>, %30, %cst_16 [1, 2] : vector<1x8x128xf32> to vector<1xf32>
      %32 = vector.shape_cast %31 : vector<1xf32> to vector<1x1x1xf32>
      %33 = vector.extract %32[0, 0, 0] : f32 from vector<1x1x1xf32>
      %c0_17 = arith.constant 0 : index
      %c0_18 = arith.constant 0 : index
      %34 = memref.load %arg4[%c0_17, %c0_18] : memref<1x1xf32, #tpu.memory_space<smem>>
      memref.store %33, %arg4[%c0_17, %c0_18] : memref<1x1xf32, #tpu.memory_space<smem>>
    } else {
    }
    return
  }
  func.func @transform_0(%arg0: i32, %arg1: i32) -> (i32, i32) {
    %c1_i32 = arith.constant 1 : i32
    %0 = arith.muli %arg0, %c1_i32 : i32
    %1 = arith.addi %0, %arg1 : i32
    %c0_i32 = arith.constant 0 : i32
    %2 = arith.minsi %1, %c0_i32 : i32
    %c0_i32_0 = arith.constant 0 : i32
    %c0_i32_1 = arith.constant 0 : i32
    return %2, %c0_i32_0 : i32, i32
  }
  func.func @transform_1(%arg0: i32, %arg1: i32) -> (i32, i32) {
    %c1_i32 = arith.constant 1 : i32
    %0 = arith.muli %arg0, %c1_i32 : i32
    %1 = arith.addi %0, %arg1 : i32
    %c0_i32 = arith.constant 0 : i32
    %2 = arith.minsi %1, %c0_i32 : i32
    %c0_i32_0 = arith.constant 0 : i32
    %c0_i32_1 = arith.constant 0 : i32
    return %2, %c0_i32_0 : i32, i32
  }
  func.func @transform_2(%arg0: i32, %arg1: i32) -> (i32, i32) {
    %c0_i32 = arith.constant 0 : i32
    %c0_i32_0 = arith.constant 0 : i32
    return %arg0, %c0_i32 : i32, i32
  }
}

</mosaic_0001>

<bundles_post_ra>
// kernel: tpu_custom_call.1
= control target key start
LH: loop header
LB: loop body
LE: loop exit
PB: predicated region body
PF: predicated region fallthrough
CT: control target
= control target key end

     0   :  { %7 = vsyncpa [#allocation4], 0  ;;  %s223_s0 = inlined_call_operand.hbm [shape: f32[16,128], index: 0, kind: input, shape index: {}]   ;;  %s224_s1 = inlined_call_operand.hbm [shape: f32[16,128], index: 1, kind: input, shape index: {}]   ;;  %s225_s2 = inlined_call_operand.hbm [shape: f32[1,1], index: 2, kind: output, shape index: {}]  }
   0x1   :  { %8 = vsyncpa [#allocation7], 0 }
   0x2   :  { %9 = vsyncpa [#allocation5], 0  ;;  %s194_s9 = smov [#allocation3]  }
   0x3   :  { %s21_s10 = sshll.u32 %s194_s9, 4  ;;  %s22_s10 = int_to_ptr.vmem [resolvable:$true] %s21_s10 }
   0x4   :  { %s148_s11 = scalar_lea.vmem %s22_s10, 256  ;;  %p153_p1 = scmp.lt.s32.totalorder %s22_s10, %s22_s10 }
   0x5   :  { %p149_p0 = scmp.ne.s32.totalorder %s22_s10, %s148_s11  ;;  %p154_p2 = scmp.lt.s32.totalorder %s148_s11, %s148_s11 }
   0x7   :  { %p155_p3 = por %p154_p2, %p153_p1 }
   0x9   :  { %p156_p4 = pnand %p155_p3, %p149_p0 }
   0xb   :  { %159 = shalt.err (!%p156_p4)
}
   0xc   :  { %s195_s12 = smov 128   ;;  %s196_s13 = smov 8  }
   0xd   :  { %27 = dma.hbm_to_vmem [thread:$0]  %s223_s0, 256, %s22_s10, [#allocation4], %s195_s12, %s195_s12, %s196_s13  }
   0xe   :  { %s197_s16 = smov [#allocation6]  }
   0xf   :  { %s39_s17 = sshll.u32 %s197_s16, 4  ;;  %s40_s17 = int_to_ptr.vmem [resolvable:$true] %s39_s17 }
  0x10   :  { %s168_s18 = scalar_lea.vmem %s40_s17, 256  ;;  %p173_p6 = scmp.lt.s32.totalorder %s40_s17, %s40_s17 }
  0x11   :  { %p169_p5 = scmp.ne.s32.totalorder %s40_s17, %s168_s18  ;;  %p174_p7 = scmp.lt.s32.totalorder %s168_s18, %s168_s18 }
  0x13   :  { %p175_p8 = por %p174_p7, %p173_p6 }
  0x15   :  { %p176_p9 = pnand %p175_p8, %p169_p5 }
  0x17   :  { %179 = shalt.err (!%p176_p9)
}
  0x18   :  { %45 = dma.hbm_to_vmem [thread:$0]  %s224_s1, 256, %s40_s17, [#allocation7], %s195_s12, %s195_s12, %s196_s13  }
  0x19   :  { %188 = dma.done.wait [#allocation4], 256  }
  0x1a   :  { %189 = vsyncadd [#allocation4], 4294967040 }
  0x1b   :  { %190 = dma.done.wait [#allocation7], 256  }
  0x1c   :  { %191 = vsyncadd [#allocation7], 4294967040  ;;  %v67_v0 = vld [vmem:[#allocation3] sm:$0xff]  ;;  %v68_v1 = vld [vmem:[#allocation3 + $0x8] sm:$0xff]  ;;  %s198_s1 = smov [#allocation8]  }
  0x1d   :  { %136 = vlog2.f32 %v67_v0  ;;  %v69_v2 = vld [vmem:[#allocation6] sm:$0xff]  ;;  %v70_v4 = vld [vmem:[#allocation6 + $0x8] sm:$0xff] }
  0x1e   :  { %138 = vlog2.f32 %v68_v1  ;;  %vm79_vm0 = vcmp.ge.f32.partialorder %v69_v2, 1.0  ;;  %vm80_vm1 = vcmp.ge.f32.partialorder %v70_v4, 1.0 }
  0x2a   :  { %v137_v3 = vpop.eup %136 }
  0x2b   :  { %v139_v5 = vpop.eup %138  ;;  %v84_v6 = vmul.f32 0.6931472, %v137_v3 }
  0x2c   :  { %v86_v7 = vmul.f32 0.6931472, %v139_v5 }
  0x2d   :  { %v87_v8 = vsub.f32 0.0, %v84_v6 }
  0x2e   :  { %v88_v9 = vsub.f32 0.0, %v86_v7 }
  0x2f   :  { %v89_v10 = vsel %vm79_vm0, %v87_v8, 0.0 }
  0x30   :  { %v90_v11 = vsel %vm80_vm1, %v88_v9, 0.0 }
  0x31   :  { %v92_v12 = vadd.f32 %v90_v11, %v89_v10 }
  0x33   :  { %99 = vadd.xlane.f32.xlu0 %v92_v12 }
  0xbc   :  { %v100_v13 = vpop.xlane.xlu0 %99 }
  0xbd   :  { %v101_v14 = vrot.slane %v100_v13, 4 }
  0xbf   :  { %v102_v15 = vadd.f32 %v101_v14, %v100_v13 }
  0xc1   :  { %v103_v16 = vrot.slane %v102_v15, 2 }
  0xc3   :  { %v104_v17 = vadd.f32 %v103_v16, %v102_v15 }
  0xc5   :  { %v105_v18 = vrot.slane %v104_v17, 1 }
  0xc7   :  { %v106_v19 = vadd.f32 %v105_v18, %v104_v17 }
  0xc9   :  { %129 = vpush %v106_v19 }
  0xfa   :  { %s130_s0 = spop %129 }
  0xfb   :  { %109 = sst [smem:[#allocation8]] %s130_s0 }
  0xfc   :  { %117 = dma.smem_to_hbm %s198_s1, 16, %s225_s2, [#allocation5]  }
  0xfd   :  { %192 = dma.done.wait [#allocation5], 16  }
  0xfe   :  { %193 = vsyncadd [#allocation5], 4294967280 }
  0xff   :  { %121 = sfence }
 0x100   :  { %122 = vsyncpa [#allocation4], 1 }
 0x101   :  { %123 = vsyncpa [#allocation7], 1 }
 0x102   :  { %124 = vsyncpa [#allocation5], 1 }

</bundles_post_ra>
